<compile_context>
chip_gen: v7x
topology: tpu7x:2x2x1
jax: 0.10.0
libtpu: 0.0.40
codegen_flags: <defaults>
</compile_context>

<pallas_src>
import jax
import jax.numpy as jnp
from jax.experimental import pallas as pl
from jax.experimental.pallas import tpu as pltpu

# Logical (PyTorch) dims.
D_IN, H1, H2, D_OUT = 784, 64, 36, 10
# Padded, lane-friendly dims used inside the kernel (output kept narrow: 16).
H1_P, H2_P, D_OUT_P = 128, 128, 16

TB_MAX = 2048      # max batch-tile rows per grid step
NEG_BIG = -1e30    # fill value for padded logit lanes (vanishes in logsumexp)


def _round_up(n, m):
    return ((n + m - 1) // m) * m


def _pad2(a, rows, cols):
    return jnp.pad(a, ((0, rows - a.shape[0]), (0, cols - a.shape[1])))


def _mlp_kernel(x_ref, w1_ref, b1_ref, w2_ref, b2_ref, w3_ref, b3_ref, o_ref):
    # x arrives f32 straight from HBM; cast to bf16 once on the VPU.
    x = x_ref[...].astype(jnp.bfloat16)

    # hidden_1 + ReLU  (dropout = identity at eval); bf16 MXU, f32 accumulate.
    h1 = jnp.dot(x, w1_ref[...], preferred_element_type=jnp.float32)
    h1 = jnp.maximum(h1 + b1_ref[...], 0.0)

    # hidden_2 + ReLU  (dropout = identity at eval)
    h2 = jnp.dot(h1.astype(jnp.bfloat16), w2_ref[...],
                 preferred_element_type=jnp.float32)
    h2 = jnp.maximum(h2 + b2_ref[...], 0.0)

    # output layer; lanes >= D_OUT get -1e30 via the padded bias (padded W3
    # columns are zero), so no explicit mask is needed before the reduction.
    logits = jnp.dot(h2.astype(jnp.bfloat16), w3_ref[...],
                     preferred_element_type=jnp.float32)
    logits = logits + b3_ref[...]

    # log_softmax over dim=1 (numerically stable); padded lanes underflow to 0
    # in the exp-sum.
    m = jnp.max(logits, axis=-1, keepdims=True)
    shifted = logits - m
    lse = jnp.log(jnp.sum(jnp.exp(shifted), axis=-1, keepdims=True))
    o_ref[...] = (shifted - lse).astype(o_ref.dtype)


def _choose_batch_tile(B):
    # Aim for >= 2 grid steps (v7x megacore) while keeping each step large
    # enough to amortize the ~0.35us per-step pipeline overhead.
    half = _round_up(max((B + 1) // 2, 1), 8)
    return min(TB_MAX, half)


@jax.jit
def network_forward(x, w1, b1, w2, b2, w3, b3):
    """Full forward pass of `Network` as a batch-tiled Pallas kernel.

    x: [B, 784] (or [B, 28, 28]) float32. Returns [B, 10] float32 log-probs.
    """
    x = x.reshape(x.shape[0], -1).astype(jnp.float32)   # mirrors x.view(B, -1)
    B = x.shape[0]
    tb = _choose_batch_tile(B)
    n_steps = pl.cdiv(B, tb)          # ragged edge handled by the grid

    # Tiny one-time weight/bias padding (< 0.3 MiB total; negligible HBM).
    w1_p = _pad2(w1, D_IN, H1_P).astype(jnp.bfloat16)
    w2_p = _pad2(w2, H1_P, H2_P).astype(jnp.bfloat16)
    w3_p = _pad2(w3, H2_P, D_OUT_P).astype(jnp.bfloat16)
    b1_p = _pad2(b1, 1, H1_P).astype(jnp.float32)
    b2_p = _pad2(b2, 1, H2_P).astype(jnp.float32)
    # Padded logit lanes get -1e30 through the bias so they cannot affect the
    # max / logsumexp; the wrapper slices them away.
    b3_p = jnp.pad(b3.astype(jnp.float32),
                   ((0, 0), (0, D_OUT_P - b3.shape[1])),
                   constant_values=NEG_BIG)

    out16 = pl.pallas_call(
        _mlp_kernel,
        out_shape=jax.ShapeDtypeStruct((B, D_OUT_P), jnp.float32),
        grid=(n_steps,),
        in_specs=[
            pl.BlockSpec((tb, D_IN), lambda i: (i, 0)),     # x: streamed f32, unpadded
            pl.BlockSpec((D_IN, H1_P), lambda i: (0, 0)),   # weights/biases resident
            pl.BlockSpec((1, H1_P), lambda i: (0, 0)),
            pl.BlockSpec((H1_P, H2_P), lambda i: (0, 0)),
            pl.BlockSpec((1, H2_P), lambda i: (0, 0)),
            pl.BlockSpec((H2_P, D_OUT_P), lambda i: (0, 0)),
            pl.BlockSpec((1, D_OUT_P), lambda i: (0, 0)),
        ],
        out_specs=pl.BlockSpec((tb, D_OUT_P), lambda i: (i, 0)),
        compiler_params=pltpu.CompilerParams(
            dimension_semantics=("parallel",),
            vmem_limit_bytes=40 * 1024 * 1024,
        ),
    )(x, w1_p, b1_p, w2_p, b2_p, w3_p, b3_p)

    return out16[:, :D_OUT]


def init_params(key):
    """Deterministic PyTorch-Linear-style init (uniform(-1/sqrt(fan_in), +))."""
    ks = jax.random.split(key, 6)

    def linear(kw, kb, fan_in, fan_out):
        bound = 1.0 / jnp.sqrt(fan_in)
        # stored as (in, out) so the kernel computes x @ W + b
        w = jax.random.uniform(kw, (fan_in, fan_out), jnp.float32, -bound, bound)
        b = jax.random.uniform(kb, (1, fan_out), jnp.float32, -bound, bound)
        return w, b

    w1, b1 = linear(ks[0], ks[1], D_IN, H1)
    w2, b2 = linear(ks[2], ks[3], H1, H2)
    w3, b3 = linear(ks[4], ks[5], H2, D_OUT)
    return w1, b1, w2, b2, w3, b3


def reference_forward_f32(x, w1, b1, w2, b2, w3, b3):
    h1 = jnp.maximum(x @ w1 + b1, 0.0)
    h2 = jnp.maximum(h1 @ w2 + b2, 0.0)
    logits = h2 @ w3 + b3
    return jax.nn.log_softmax(logits, axis=1)


def reference_forward_bf16(x, w1, b1, w2, b2, w3, b3):
    """Mirrors the kernel's bf16-inputs / f32-accumulate mixed precision."""
    bf = lambda a: a.astype(jnp.bfloat16).astype(jnp.float32)
    h1 = jnp.maximum(bf(x) @ bf(w1) + b1, 0.0)
    h2 = jnp.maximum(bf(h1) @ bf(w2) + b2, 0.0)
    logits = bf(h2) @ bf(w3) + b3
    return jax.nn.log_softmax(logits, axis=1)


if __name__ == "__main__":
    key = jax.random.PRNGKey(0)
    k_x, k_p = jax.random.split(key)

    B = 8  # small batch
    x = jax.random.uniform(k_x, (B, D_IN), jnp.float32)  # flattened 28x28 pixels
    params = init_params(k_p)

    out = network_forward(x, *params)
    out = jax.block_until_ready(out)
    assert out.shape == (B, D_OUT)

    ref_bf16 = reference_forward_bf16(x, *params)
    ref_f32 = reference_forward_f32(x, *params)
    assert jnp.allclose(out, ref_bf16, atol=1e-2, rtol=1e-2), "mismatch vs bf16 reference"
    assert jnp.allclose(out, ref_f32, atol=1e-1, rtol=1e-1), "mismatch vs f32 reference"

    print("KERNEL_OK")
</pallas_src>

<mosaic_0001>
module attributes {stable_mosaic.version = 11 : i64} {
  func.func @_mlp_kernel(%arg0: i32, %arg1: memref<8x784xf32, #tpu.memory_space<vmem>>, %arg2: memref<784x128xbf16, #tpu.memory_space<vmem>>, %arg3: memref<1x128xf32, #tpu.memory_space<vmem>>, %arg4: memref<128x128xbf16, #tpu.memory_space<vmem>>, %arg5: memref<1x128xf32, #tpu.memory_space<vmem>>, %arg6: memref<128x16xbf16, #tpu.memory_space<vmem>>, %arg7: memref<1x16xf32, #tpu.memory_space<vmem>>, %arg8: memref<8x16xf32, #tpu.memory_space<vmem>>) attributes {dimension_semantics = [#tpu.dimension_semantics<parallel>], iteration_bounds = array<i64: 1>, scalar_prefetch = 0 : i64, scratch_operands = 0 : i64, tpu.core_type = #tpu.core_type<tc>, window_params = [{transform_indices = @transform_0, window_bounds = array<i64: 8, 784>}, {pipeline_mode = #tpu.pipeline_mode<synchronous>, transform_indices = @transform_1, window_bounds = array<i64: 784, 128>}, {pipeline_mode = #tpu.pipeline_mode<synchronous>, transform_indices = @transform_2, window_bounds = array<i64: 1, 128>}, {pipeline_mode = #tpu.pipeline_mode<synchronous>, transform_indices = @transform_3, window_bounds = array<i64: 128, 128>}, {pipeline_mode = #tpu.pipeline_mode<synchronous>, transform_indices = @transform_4, window_bounds = array<i64: 1, 128>}, {pipeline_mode = #tpu.pipeline_mode<synchronous>, transform_indices = @transform_5, window_bounds = array<i64: 128, 16>}, {pipeline_mode = #tpu.pipeline_mode<synchronous>, transform_indices = @transform_6, window_bounds = array<i64: 1, 16>}, {transform_indices = @transform_7, window_bounds = array<i64: 8, 16>}]} {
    %c0 = arith.constant 0 : index
    %c0_0 = arith.constant 0 : index
    %0 = vector.load %arg1[%c0, %c0_0] : memref<8x784xf32, #tpu.memory_space<vmem>>, vector<8x784xf32>
    %1 = arith.truncf %0 : vector<8x784xf32> to vector<8x784xbf16>
    %c0_1 = arith.constant 0 : index
    %c0_2 = arith.constant 0 : index
    %2 = vector.load %arg2[%c0_1, %c0_2] : memref<784x128xbf16, #tpu.memory_space<vmem>>, vector<784x128xbf16>
    %cst = arith.constant dense<0.000000e+00> : vector<8x128xf32>
    %3 = tpu.matmul %1, %2, %cst {dimension_numbers = #tpu.dot_dimension_numbers<[1], [0], [0], [1], [0, 0, 1, 1], [], []>} : vector<8x784xbf16>, vector<784x128xbf16>, vector<8x128xf32> -> vector<8x128xf32>
    %c0_3 = arith.constant 0 : index
    %c0_4 = arith.constant 0 : index
    %4 = vector.load %arg3[%c0_3, %c0_4] : memref<1x128xf32, #tpu.memory_space<vmem>>, vector<1x128xf32>
    %5 = vector.broadcast %4 : vector<1x128xf32> to vector<8x128xf32>
    %6 = arith.addf %3, %5 : vector<8x128xf32>
    %cst_5 = arith.constant 0.000000e+00 : f32
    %7 = vector.broadcast %cst_5 : f32 to vector<8x128xf32>
    %8 = arith.maximumf %6, %7 : vector<8x128xf32>
    %9 = arith.truncf %8 : vector<8x128xf32> to vector<8x128xbf16>
    %c0_6 = arith.constant 0 : index
    %c0_7 = arith.constant 0 : index
    %10 = vector.load %arg4[%c0_6, %c0_7] : memref<128x128xbf16, #tpu.memory_space<vmem>>, vector<128x128xbf16>
    %cst_8 = arith.constant dense<0.000000e+00> : vector<8x128xf32>
    %11 = tpu.matmul %9, %10, %cst_8 {dimension_numbers = #tpu.dot_dimension_numbers<[1], [0], [0], [1], [0, 0, 1, 1], [], []>} : vector<8x128xbf16>, vector<128x128xbf16>, vector<8x128xf32> -> vector<8x128xf32>
    %c0_9 = arith.constant 0 : index
    %c0_10 = arith.constant 0 : index
    %12 = vector.load %arg5[%c0_9, %c0_10] : memref<1x128xf32, #tpu.memory_space<vmem>>, vector<1x128xf32>
    %13 = vector.broadcast %12 : vector<1x128xf32> to vector<8x128xf32>
    %14 = arith.addf %11, %13 : vector<8x128xf32>
    %cst_11 = arith.constant 0.000000e+00 : f32
    %15 = vector.broadcast %cst_11 : f32 to vector<8x128xf32>
    %16 = arith.maximumf %14, %15 : vector<8x128xf32>
    %17 = arith.truncf %16 : vector<8x128xf32> to vector<8x128xbf16>
    %c0_12 = arith.constant 0 : index
    %c0_13 = arith.constant 0 : index
    %18 = vector.load %arg6[%c0_12, %c0_13] : memref<128x16xbf16, #tpu.memory_space<vmem>>, vector<128x16xbf16>
    %cst_14 = arith.constant dense<0.000000e+00> : vector<8x16xf32>
    %19 = tpu.matmul %17, %18, %cst_14 {dimension_numbers = #tpu.dot_dimension_numbers<[1], [0], [0], [1], [0, 0, 1, 1], [], []>} : vector<8x128xbf16>, vector<128x16xbf16>, vector<8x16xf32> -> vector<8x16xf32>
    %c0_15 = arith.constant 0 : index
    %c0_16 = arith.constant 0 : index
    %20 = vector.load %arg7[%c0_15, %c0_16] : memref<1x16xf32, #tpu.memory_space<vmem>>, vector<1x16xf32>
    %21 = vector.broadcast %20 : vector<1x16xf32> to vector<8x16xf32>
    %22 = arith.addf %19, %21 : vector<8x16xf32>
    %cst_17 = arith.constant dense<0xFF800000> : vector<8xf32>
    %23 = vector.multi_reduction <maximumf>, %22, %cst_17 [1] : vector<8x16xf32> to vector<8xf32>
    %24 = vector.shape_cast %23 : vector<8xf32> to vector<8x1xf32>
    %25 = vector.broadcast %24 : vector<8x1xf32> to vector<8x16xf32>
    %26 = arith.subf %22, %25 : vector<8x16xf32>
    %27 = math.exp %26 : vector<8x16xf32>
    %cst_18 = arith.constant dense<0.000000e+00> : vector<8xf32>
    %28 = vector.multi_reduction <add>, %27, %cst_18 [1] : vector<8x16xf32> to vector<8xf32>
    %29 = vector.shape_cast %28 : vector<8xf32> to vector<8x1xf32>
    %30 = math.log %29 : vector<8x1xf32>
    %31 = vector.broadcast %30 : vector<8x1xf32> to vector<8x16xf32>
    %32 = arith.subf %26, %31 : vector<8x16xf32>
    %c0_19 = arith.constant 0 : index
    %c0_20 = arith.constant 0 : index
    %33 = vector.load %arg8[%c0_19, %c0_20] : memref<8x16xf32, #tpu.memory_space<vmem>>, vector<8x16xf32>
    tpu.vector_store %arg8[%c0_19, %c0_20], %32 {strides = array<i32>} : memref<8x16xf32, #tpu.memory_space<vmem>>, vector<8x16xf32>,
    return
  }
  func.func @transform_0(%arg0: i32) -> (i32, i32) {
    %c0_i32 = arith.constant 0 : i32
    %c0_i32_0 = arith.constant 0 : i32
    return %arg0, %c0_i32 : i32, i32
  }
  func.func @transform_1(%arg0: i32) -> (i32, i32) {
    %c0_i32 = arith.constant 0 : i32
    %c0_i32_0 = arith.constant 0 : i32
    %c0_i32_1 = arith.constant 0 : i32
    return %c0_i32, %c0_i32_0 : i32, i32
  }
  func.func @transform_2(%arg0: i32) -> (i32, i32) {
    %c0_i32 = arith.constant 0 : i32
    %c0_i32_0 = arith.constant 0 : i32
    %c0_i32_1 = arith.constant 0 : i32
    return %c0_i32, %c0_i32_0 : i32, i32
  }
  func.func @transform_3(%arg0: i32) -> (i32, i32) {
    %c0_i32 = arith.constant 0 : i32
    %c0_i32_0 = arith.constant 0 : i32
    %c0_i32_1 = arith.constant 0 : i32
    return %c0_i32, %c0_i32_0 : i32, i32
  }
  func.func @transform_4(%arg0: i32) -> (i32, i32) {
    %c0_i32 = arith.constant 0 : i32
    %c0_i32_0 = arith.constant 0 : i32
    %c0_i32_1 = arith.constant 0 : i32
    return %c0_i32, %c0_i32_0 : i32, i32
  }
  func.func @transform_5(%arg0: i32) -> (i32, i32) {
    %c0_i32 = arith.constant 0 : i32
    %c0_i32_0 = arith.constant 0 : i32
    %c0_i32_1 = arith.constant 0 : i32
    return %c0_i32, %c0_i32_0 : i32, i32
  }
  func.func @transform_6(%arg0: i32) -> (i32, i32) {
    %c0_i32 = arith.constant 0 : i32
    %c0_i32_0 = arith.constant 0 : i32
    %c0_i32_1 = arith.constant 0 : i32
    return %c0_i32, %c0_i32_0 : i32, i32
  }
  func.func @transform_7(%arg0: i32) -> (i32, i32) {
    %c0_i32 = arith.constant 0 : i32
    %c0_i32_0 = arith.constant 0 : i32
    return %arg0, %c0_i32 : i32, i32
  }
}

</mosaic_0001>

<bundles_post_ra>
// kernel: network_forward.1
= control target key start
LH: loop header
LB: loop body
LE: loop exit
PB: predicated region body
PF: predicated region fallthrough
CT: control target
= control target key end

     0   :  { %v1155_v44 = vmov 0.0   ;;  %vm1156_vm0 = vmmov 0   ;;  %vm441_vm1 = vcmask 130048   ;;  %s1462_s0 = inlined_call_operand.vmem [shape: f32[8,784], index: 0, kind: input, shape index: {}]   ;;  %s1463_s1 = inlined_call_operand.vmem [shape: bf16[784,128], index: 1, kind: input, shape index: {}]   ;;  %s1464_s2 = inlined_call_operand.vmem [shape: f32[1,128], index: 2, kind: input, shape index: {}]   ;;  %s1465_s3 = inlined_call_operand.vmem [shape: bf16[128,128], index: 3, kind: input, shape index: {}]   ;;  %s1466_s4 = inlined_call_operand.vmem [shape: f32[1,128], index: 4, kind: input, shape index: {}]   ;;  %s1467_s5 = inlined_call_operand.vmem [shape: bf16[128,16], index: 5, kind: input, shape index: {}]   ;;  %s1468_s6 = inlined_call_operand.vmem [shape: f32[1,16], index: 6, kind: input, shape index: {}]   ;;  %s1469_s7 = inlined_call_operand.hbm [shape: f32[8,16], index: 7, kind: output, shape index: {}]  }
   0x1   :  { %v1062_v0 = vld [vmem:[%s1463_s1 + $0x40] sm:$0xff]   ;;  %v1066_v4 = vld [vmem:[%s1463_s1 + $0x48] sm:$0xff]   ;;  %v1070_v8 = vld [vmem:[%s1463_s1 + $0x50] sm:$0xff]  }
   0x2   :  { %v1063_v1 = vld [vmem:[%s1463_s1] sm:$0xff]   ;;  %927 = vmatprep.subr.bf16.mxu0 %v1062_v0  ;;  %v1067_v5 = vld [vmem:[%s1463_s1 + $0x8] sm:$0xff]   ;;  %v1071_v9 = vld [vmem:[%s1463_s1 + $0x10] sm:$0xff]  }
   0x3   :  { %v1064_v2 = vld [vmem:[%s1463_s1 + $0xc0] sm:$0xff]   ;;  %928 = vmatpush3.bf16.msra.mxu0 %v1063_v1  ;;  %v1068_v6 = vld [vmem:[%s1463_s1 + $0xc8] sm:$0xff]   ;;  %v1072_v10 = vld [vmem:[%s1463_s1 + $0xd0] sm:$0xff]  }
   0x4   :  { %v1065_v3 = vld [vmem:[%s1463_s1 + $0x80] sm:$0xff]   ;;  %949 = vmatprep.subr.bf16.mxu1 %v1064_v2  ;;  %929 = vmatprep.subr.bf16.mxu0 %v1066_v4  ;;  %v1069_v7 = vld [vmem:[%s1463_s1 + $0x88] sm:$0xff]   ;;  %v1073_v11 = vld [vmem:[%s1463_s1 + $0x90] sm:$0xff]  }
   0x5   :  { %950 = vmatpush3.bf16.msra.mxu1 %v1065_v3  ;;  %v1074_v12 = vld [vmem:[%s1463_s1 + $0x58] sm:$0xff]   ;;  %v1078_v16 = vld [vmem:[%s1463_s1 + $0x60] sm:$0xff]   ;;  %v1082_v20 = vld [vmem:[%s1463_s1 + $0x68] sm:$0xff]  }
   0x6   :  { %951 = vmatprep.subr.bf16.mxu1 %v1068_v6  ;;  %v1075_v13 = vld [vmem:[%s1463_s1 + $0x18] sm:$0xff]   ;;  %v1079_v17 = vld [vmem:[%s1463_s1 + $0x20] sm:$0xff]   ;;  %v1083_v21 = vld [vmem:[%s1463_s1 + $0x28] sm:$0xff]  }
   0x7   :  { %930 = vmatpush3.bf16.msra.mxu0 %v1067_v5  ;;  %v1076_v14 = vld [vmem:[%s1463_s1 + $0xd8] sm:$0xff]   ;;  %v1080_v18 = vld [vmem:[%s1463_s1 + $0xe0] sm:$0xff]   ;;  %v1084_v22 = vld [vmem:[%s1463_s1 + $0xe8] sm:$0xff]  }
   0x8   :  { %931 = vmatprep.subr.bf16.mxu0 %v1070_v8  ;;  %v1077_v15 = vld [vmem:[%s1463_s1 + $0x98] sm:$0xff]   ;;  %v1081_v19 = vld [vmem:[%s1463_s1 + $0xa0] sm:$0xff]   ;;  %v1085_v23 = vld [vmem:[%s1463_s1 + $0xa8] sm:$0xff]  }
   0x9   :  { %952 = vmatpush3.bf16.msra.mxu1 %v1069_v7  ;;  %v1086_v24 = vld [vmem:[%s1463_s1 + $0x70] sm:$0xff]   ;;  %v1090_v28 = vld [vmem:[%s1463_s1 + $0x78] sm:$0xff]   ;;  %v29_v31 = vld [vmem:[%s1462_s0 + $0x8] sm:$0xff] }
   0xa   :  { %953 = vmatprep.subr.bf16.mxu1 %v1072_v10  ;;  %v1087_v25 = vld [vmem:[%s1463_s1 + $0x30] sm:$0xff]   ;;  %v1091_v29 = vld [vmem:[%s1463_s1 + $0x38] sm:$0xff]   ;;  %v36_v32 = vpack.c.bf16 %v29_v31, %v29_v31  ;;  %v28_v34 = vld [vmem:[%s1462_s0] sm:$0xff] }
   0xb   :  { %932 = vmatpush3.bf16.msra.mxu0 %v1071_v9  ;;  %v1088_v26 = vld [vmem:[%s1463_s1 + $0xf0] sm:$0xff]   ;;  %v1092_v30 = vld [vmem:[%s1463_s1 + $0xf8] sm:$0xff]   ;;  %v35_v35 = vpack.c.bf16 %v28_v34, %v28_v34  ;;  %v1094_v36 = vld [vmem:[%s1463_s1 + $0x140] sm:$0xff]  }
   0xc   :  { %933 = vmatprep.subr.bf16.mxu0 %v1074_v12  ;;  %v1089_v27 = vld [vmem:[%s1463_s1 + $0xb0] sm:$0xff]   ;;  %v1093_v33 = vld [vmem:[%s1463_s1 + $0xb8] sm:$0xff]   ;;  %477 = vmatprep.mubr.bf16.mxu0 %v36_v32  ;;  %v1095_v39 = vld [vmem:[%s1463_s1 + $0x100] sm:$0xff]  }
   0xd   :  { %954 = vmatpush3.bf16.msra.mxu1 %v1073_v11  ;;  %v31_v37 = vld [vmem:[%s1462_s0 + $0x18] sm:$0xff]  ;;  %v30_v40 = vld [vmem:[%s1462_s0 + $0x10] sm:$0xff]  ;;  %v1096_v42 = vld [vmem:[%s1463_s1 + $0x148] sm:$0xff]  }
   0xe   :  { %955 = vmatprep.subr.bf16.mxu1 %v1076_v14  ;;  %v38_v38 = vpack.c.bf16 %v31_v37, %v31_v37  ;;  %v37_v41 = vpack.c.bf16 %v30_v40, %v30_v40  ;;  %v1097_v43 = vld [vmem:[%s1463_s1 + $0x108] sm:$0xff]   ;;  %v1098_v45 = vld [vmem:[%s1463_s1 + $0x150] sm:$0xff]   ;;  %v1100_v47 = vld [vmem:[%s1463_s1 + $0x158] sm:$0xff]  }
   0xf   :  { %934 = vmatpush3.bf16.msra.mxu0 %v1075_v13  ;;  %v1099_v46 = vld [vmem:[%s1463_s1 + $0x110] sm:$0xff]   ;;  %v1101_v48 = vld [vmem:[%s1463_s1 + $0x118] sm:$0xff]   ;;  %v1102_v49 = vld [vmem:[%s1463_s1 + $0x160] sm:$0xff]  }
  0x10   :  { %935 = vmatprep.subr.bf16.mxu0 %v1078_v16  ;;  %517 = vmatprep.mubr.bf16.mxu1 %v38_v38  ;;  %v1103_v50 = vld [vmem:[%s1463_s1 + $0x120] sm:$0xff]   ;;  %v1104_v51 = vld [vmem:[%s1463_s1 + $0x168] sm:$0xff]   ;;  %v1106_v55 = vld [vmem:[%s1463_s1 + $0x170] sm:$0xff]  }
  0x11   :  { %956 = vmatpush3.bf16.msra.mxu1 %v1077_v15  ;;  %v1105_v52 = vld [vmem:[%s1463_s1 + $0x128] sm:$0xff]   ;;  %v1110_v53 = vld [vmem:[%s1463_s1 + $0x180] sm:$0xff]   ;;  %v34_v57 = vld [vmem:[%s1462_s0 + $0x30] sm:$0xff] }
  0x12   :  { %957 = vmatprep.subr.bf16.mxu1 %v1080_v18  ;;  %v33_v54 = vld [vmem:[%s1462_s0 + $0x28] sm:$0xff]  ;;  %v41_v58 = vpack.c.bf16 %v34_v57, %v34_v57  ;;  %v1107_v59 = vld [vmem:[%s1463_s1 + $0x130] sm:$0xff]   ;;  %v1108_v60 = vld [vmem:[%s1463_s1 + $0x178] sm:$0xff]  }
  0x13   :  { %936 = vmatpush3.bf16.msra.mxu0 %v1079_v17  ;;  %v40_v56 = vpack.c.bf16 %v33_v54, %v33_v54  ;;  %v1109_v61 = vld [vmem:[%s1463_s1 + $0x138] sm:$0xff]   ;;  %v32_v62 = vld [vmem:[%s1462_s0 + $0x20] sm:$0xff] }
  0x14   :  { %937 = vmatprep.subr.bf16.mxu0 %v1082_v20 }
  0x15   :  { %958 = vmatpush3.bf16.msra.mxu1 %v1081_v19 }
  0x16   :  { %959 = vmatprep.subr.bf16.mxu1 %v1084_v22 }
  0x17   :  { %938 = vmatpush3.bf16.msra.mxu0 %v1083_v21 }
  0x18   :  { %939 = vmatprep.subr.bf16.mxu0 %v1086_v24 }
  0x19   :  { %960 = vmatpush3.bf16.msra.mxu1 %v1085_v23 }
  0x1a   :  { %961 = vmatprep.subr.bf16.mxu1 %v1088_v26 }
  0x1b   :  { %940 = vmatpush3.bf16.msra.mxu0 %v1087_v25 }
  0x1c   :  { %941 = vmatprep.subr.bf16.mxu0 %v1090_v28 }
  0x1d   :  { %962 = vmatpush3.bf16.msra.mxu1 %v1089_v27 }
  0x1e   :  { %963 = vmatprep.subr.bf16.mxu1 %v1092_v30 }
  0x1f   :  { %942 = vmatpush3.bf16.msra.mxu0 %v1091_v29 }
  0x20   :  { %971 = vmatprep.subr.bf16.mxu0 %v1094_v36 }
  0x21   :  { %964 = vmatpush3.bf16.msra.mxu1 %v1093_v33 }
  0x22   :  { %478 = vmatmul.mubr.bf16.vlgmr.msra.gmra.mrb[0].mxu0 %v35_v35  ;;  %1013 = vmatprep.subr.bf16.mxu1 %v1155_v44 }
  0x23   :  { %972 = vmatpush3.bf16.msra.mxu0 %v1095_v39  ;;  %557 = vmatprep.mubr.bf16.mxu0 %v40_v56 }
  0x24   :  { %518 = vmatmul.mubr.bf16.vlgmr.msra.gmra.mrb[0].mxu1 %v37_v41  ;;  %973 = vmatprep.subr.bf16.mxu0 %v1096_v42 }
  0x25   :  { %1015 = vmatprep.mubr.msk.bf16.mxu1 %vm1156_vm0, %v1155_v44  ;;  %1014 = vmatpush3.bf16.msra.mxu1 %v1110_v53 }
  0x26   :  { %1019 = vmatprep.subr.bf16.mxu1 %v1155_v44 }
  0x27   :  { %974 = vmatpush3.bf16.msra.mxu0 %v1097_v43 }
  0x28   :  { %975 = vmatprep.subr.bf16.mxu0 %v1098_v45 }
  0x2b   :  { %976 = vmatpush3.bf16.msra.mxu0 %v1099_v46 }
  0x2c   :  { %977 = vmatprep.subr.bf16.mxu0 %v1100_v47  ;;  %1016 = vmatmul.mubr.msk.bf16.vlgmr.msra.gmra.mrb[4].mxu1 %vm441_vm1, %v41_v58 }
  0x2d   :  { %1035 = vmatprep.mubr.msk.bf16.mxu1 %vm1156_vm0, %v1155_v44 }
  0x2f   :  { %978 = vmatpush3.bf16.msra.mxu0 %v1101_v48 }
  0x30   :  { %979 = vmatprep.subr.bf16.mxu0 %v1102_v49 }
  0x33   :  { %980 = vmatpush3.bf16.msra.mxu0 %v1103_v50 }
  0x34   :  { %981 = vmatprep.subr.bf16.mxu0 %v1104_v51 }
  0x37   :  { %982 = vmatpush3.bf16.msra.mxu0 %v1105_v52 }
  0x38   :  { %983 = vmatprep.subr.bf16.mxu0 %v1106_v55 }
  0x3b   :  { %984 = vmatpush3.bf16.msra.mxu0 %v1107_v59 }
  0x3c   :  { %985 = vmatprep.subr.bf16.mxu0 %v1108_v60 }
  0x3d   :  { %12 = vsyncpa [#allocation3], 0  ;;  %v39_v63 = vpack.c.bf16 %v32_v62, %v32_v62  ;;  %v1111_v0 = vld [vmem:[%s1465_s3] sm:$0xff]   ;;  %v1112_v1 = vld [vmem:[%s1465_s3 + $0x8] sm:$0xff]  }
  0x3e   :  { %1020 = vmatpush3.bf16.msra.mxu1 %v1111_v0  ;;  %v1113_v2 = vld [vmem:[%s1465_s3 + $0x10] sm:$0xff]   ;;  %v1114_v3 = vld [vmem:[%s1465_s3 + $0x18] sm:$0xff]   ;;  %v1115_v4 = vld [vmem:[%s1465_s3 + $0x20] sm:$0xff]  }
  0x3f   :  { %986 = vmatpush3.bf16.msra.mxu0 %v1109_v61  ;;  %1021 = vmatprep.subr.bf16.mxu1 %v1155_v44  ;;  %v1116_v5 = vld [vmem:[%s1465_s3 + $0x28] sm:$0xff]   ;;  %v1117_v6 = vld [vmem:[%s1465_s3 + $0x30] sm:$0xff]   ;;  %v1118_v7 = vld [vmem:[%s1465_s3 + $0x38] sm:$0xff]  }
  0x40   :  { %1039 = vmatprep.subr.bf16.mxu0 %v1155_v44  ;;  %v1119_v8 = vld [vmem:[%s1467_s5] sm:$0xff]   ;;  %v1120_v9 = vld [vmem:[%s1467_s5 + $0x8] sm:$0xff]   ;;  %v1121_v10 = vld [vmem:[%s1467_s5 + $0x10] sm:$0xff]  }
  0x41   :  { %v1122_v11 = vld [vmem:[%s1467_s5 + $0x18] sm:$0xff]   ;;  %v1123_v12 = vld [vmem:[%s1467_s5 + $0x20] sm:$0xff]   ;;  %v1124_v13 = vld [vmem:[%s1467_s5 + $0x28] sm:$0xff]  }
  0x42   :  { %558 = vmatmul.mubr.bf16.vlgmr.msra.gmra.mrb[4].mxu0 %v39_v63  ;;  %1022 = vmatpush3.bf16.msra.mxu1 %v1112_v1  ;;  %v858_v15 = vld [vmem:[%s1464_s2] ss:$0 sm:$0xff]  ;;  %v1125_v40 = vld [vmem:[%s1467_s5 + $0x30] sm:$0xff]   ;;  %v1126_v41 = vld [vmem:[%s1467_s5 + $0x38] sm:$0xff]  }
  0x43   :  { %1055 = vmatprep.mubr.msk.bf16.mxu0 %vm1156_vm0, %v1155_v44  ;;  %1023 = vmatprep.subr.bf16.mxu1 %v1155_v44  ;;  %v909_v42 = vld [vmem:[%s1466_s4] ss:$0 sm:$0xff]  ;;  %s1157_s4 = smov [#allocation2]  }
  0x44   :  { %1040 = vmatpush3.bf16.msra.mxu0 %v1119_v8  ;;  %s850_s5 = sshll.u32 %s1157_s4, 4  ;;  %s851_s5 = int_to_ptr.vmem [resolvable:$true] %s850_s5 }
  0x45   :  { %1041 = vmatprep.subr.bf16.mxu0 %v1155_v44  ;;  %p1136_p1 = scmp.lt.s32.totalorder %s851_s5, %s851_s5 }
  0x46   :  { %1024 = vmatpush3.bf16.msra.mxu1 %v1113_v2 }
  0x47   :  { %1025 = vmatprep.subr.bf16.mxu1 %v1155_v44 }
  0x48   :  { %1042 = vmatpush3.bf16.msra.mxu0 %v1120_v9 }
  0x49   :  { %1043 = vmatprep.subr.bf16.mxu0 %v1155_v44 }
  0x4a   :  { %1026 = vmatpush3.bf16.msra.mxu1 %v1114_v3 }
  0x4b   :  { %1027 = vmatprep.subr.bf16.mxu1 %v1155_v44 }
  0x4c   :  { %1044 = vmatpush3.bf16.msra.mxu0 %v1121_v10 }
  0x4d   :  { %1045 = vmatprep.subr.bf16.mxu0 %v1155_v44 }
  0x4e   :  { %1028 = vmatpush3.bf16.msra.mxu1 %v1115_v4 }
  0x4f   :  { %1029 = vmatprep.subr.bf16.mxu1 %v1155_v44 }
  0x50   :  { %1046 = vmatpush3.bf16.msra.mxu0 %v1122_v11 }
  0x51   :  { %1047 = vmatprep.subr.bf16.mxu0 %v1155_v44 }
  0x52   :  { %1030 = vmatpush3.bf16.msra.mxu1 %v1116_v5 }
  0x53   :  { %1031 = vmatprep.subr.bf16.mxu1 %v1155_v44 }
  0x54   :  { %1048 = vmatpush3.bf16.msra.mxu0 %v1123_v12 }
  0x55   :  { %1049 = vmatprep.subr.bf16.mxu0 %v1155_v44 }
  0x56   :  { %1032 = vmatpush3.bf16.msra.mxu1 %v1117_v6 }
  0x57   :  { %1033 = vmatprep.subr.bf16.mxu1 %v1155_v44 }
  0x58   :  { %1050 = vmatpush3.bf16.msra.mxu0 %v1124_v13 }
  0x59   :  { %1051 = vmatprep.subr.bf16.mxu0 %v1155_v44 }
  0x5a   :  { %1034 = vmatpush3.bf16.msra.mxu1 %v1118_v7 }
  0x5c   :  { %1052 = vmatpush3.bf16.msra.mxu0 %v1125_v40 }
  0x5d   :  { %1053 = vmatprep.subr.bf16.mxu0 %v1155_v44  ;;  %v918_v44 = vld [vmem:[%s1468_s6] ss:$0 sm:$0xff]  ;;  %s1131_s6 = scalar_lea.vmem %s851_s5, 128 }
  0x5e   :  { %p1132_p0 = scmp.ne.s32.totalorder %s851_s5, %s1131_s6  ;;  %p1137_p2 = scmp.lt.s32.totalorder %s1131_s6, %s1131_s6 }
  0x60   :  { %1054 = vmatpush3.bf16.msra.mxu0 %v1126_v41  ;;  %p1138_p3 = por %p1137_p2, %p1136_p1 }
  0x62   :  { %p1139_p4 = pnand %p1138_p3, %p1132_p0 }
  0xf5   :  { %v943_v14 = vpop.f32.mrb[0].mxu0 }
  0xf6   :  { %v944_v16 = vpop.f32.mrb[1].mxu0 }
  0xf7   :  { %v945_v17 = vadd.f32 %v944_v16, %v943_v14  ;;  %v946_v18 = vpop.f32.mrb[2].mxu0  ;;  %v965_v19 = vpop.f32.mrb[0].mxu1 }
  0xf8   :  { %v947_v20 = vpop.f32.mrb[3].mxu0  ;;  %v966_v22 = vpop.f32.mrb[1].mxu1 }
  0xf9   :  { %v480_v21 = vadd.f32 %v945_v17, %v858_v15  ;;  %v967_v23 = vadd.f32 %v966_v22, %v965_v19  ;;  %v968_v24 = vpop.f32.mrb[2].mxu1 }
  0xfa   :  { %v969_v25 = vpop.f32.mrb[3].mxu1 }
  0xfb   :  { %v520_v26 = vadd.f32 %v967_v23, %v480_v21 }
  0xff   :  { %v599_v27 = vpop.f32.mrb[4].mxu1 }
 0x100   :  { %v1017_v28 = vpop.f32.mrb[5].mxu1 }
 0x101   :  { %v602_v29 = vpop.f32.mrb[6].mxu1 }
 0x102   :  { %v1018_v30 = vpop.f32.mrb[7].mxu1 }
 0x115   :  { %v987_v31 = vpop.f32.mrb[4].mxu0 }
 0x116   :  { %v988_v32 = vpop.f32.mrb[5].mxu0 }
 0x117   :  { %v989_v33 = vadd.f32 %v988_v32, %v987_v31  ;;  %v990_v34 = vpop.f32.mrb[6].mxu0 }
 0x118   :  { %v991_v35 = vpop.f32.mrb[7].mxu0 }
 0x119   :  { %v560_v36 = vadd.f32 %v989_v33, %v520_v26 }
 0x11b   :  { %v600_v37 = vadd.f32 %v599_v27, %v560_v36 }
 0x11d   :  { %v605_v38 = vmax.f32 %v600_v37, 0.0 }
 0x11f   :  { %v606_v39 = vpack.c.bf16 %v605_v38, %v605_v38 }
 0x121   :  { %1036 = vmatmul.mubr.bf16.vlgmr.msra.gmra.mrb[8].mxu1 %v606_v39 }
 0x1f4   :  { %v712_v43 = vpop.f32.mrb[8].mxu1 }
 0x1f5   :  { %v713_v45 = vadd.f32 %v909_v42, %v712_v43  ;;  %v1037_v46 = vpop.f32.mrb[9].mxu1 }
 0x1f6   :  { %v715_v47 = vpop.f32.mrb[10].mxu1 }
 0x1f7   :  { %v718_v48 = vmax.f32 %v713_v45, 0.0  ;;  %v1038_v49 = vpop.f32.mrb[11].mxu1 }
 0x1f9   :  { %v719_v50 = vpack.c.bf16 %v718_v48, %v718_v48 }
 0x1fb   :  { %1056 = vmatmul.mubr.bf16.vlgmr.msra.gmra.mrb[8].mxu0 %v719_v50 }
 0x2ce   :  { %v825_v51 = vpop.f32.mrb[8].mxu0 }
 0x2cf   :  { %v826_v52 = vadd.f32 %v918_v44, %v825_v51  ;;  %v1057_v53 = vpop.f32.mrb[9].mxu0 }
 0x2d0   :  { %v828_v54 = vpop.f32.mrb[10].mxu0 }
 0x2d1   :  { %v1058_v55 = vpop.f32.mrb[11].mxu0  ;;  %v831_v56 = vsel %vm441_vm1, %v826_v52, -inf }
 0x2d2   :  { %832 = vmax.xlane.f32.xlu0 %v831_v56 }
 0x35f   :  { %v833_v57 = vpop.xlane.xlu0 %832 }
 0x360   :  { %v834_v58 = vsub.f32 %v826_v52, %v833_v57 }
 0x362   :  { %v835_v59 = vmul.f32 1.442695, %v834_v58 }
 0x364   :  { %1127 = vpow2.f32 %v835_v59 }
 0x36e   :  { %v1128_v60 = vpop.eup %1127 }
 0x36f   :  { %v837_v61 = vsel %vm441_vm1, %v1128_v60, 0.0 }
 0x370   :  { %838 = vadd.xlane.f32.xlu0 %v837_v61 }
 0x3fd   :  { %v839_v62 = vpop.xlane.xlu0 %838 }
 0x3fe   :  { %1129 = vlog2.f32 %v839_v62 }
 0x408   :  { %v1130_v63 = vpop.eup %1129 }
 0x409   :  { %v841_v0 = vmul.f32 0.6931472, %v1130_v63 }
 0x40b   :  { %v842_v1 = vsub.f32 %v834_v58, %v841_v0 }
 0x40d   :  { %843 = vst.msk [vmem:[#allocation2] sm:$0xff] %vm441_vm1, %v842_v1 }
 0x40e   :  { %1142 = shalt.err (!%p1139_p4)
}
 0x40f   :  { %s1143_s9 = scalar_lea.hbm %s1469_s7, 128 }
 0x410   :  { %p1144_p5 = scmp.ne.s32.totalorder %s1469_s7, %s1143_s9  ;;  %p1147_p6 = scmp.lt.u32.totalorder %s1143_s9, %s1469_s7 }
 0x412   :  { %p1149_p7 = pnand %p1147_p6, %p1144_p5 }
 0x414   :  { %1152 = shalt.err (!%p1149_p7)
}
 0x415   :  { %853 = dma.vmem_to_hbm [thread:$0]  %s851_s5, 128, %s1469_s7, [#allocation3]  }
 0x416   :  { %1153 = dma.done.wait [#allocation3], 128  }
 0x417   :  { %1154 = vsyncadd [#allocation3], 4294967168 }
 0x418   :  { %857 = vsyncpa [#allocation3], 1 }

</bundles_post_ra>
